<compile_context>
chip_gen: v5e
topology: v5e:2x2
jax: 0.10.0
libtpu: 0.0.40
codegen_flags: <defaults>
</compile_context>

<pallas_src>
import functools

import jax
import jax.numpy as jnp
from jax.experimental import pallas as pl
from jax.experimental.pallas import tpu as pltpu


def _infonce_kernel(zpred_ref, zpos_ref, zneg_ref, out_ref, m_ref, s_ref,
                    *, tb, p, nc, n_neg):
    """One (batch-tile, candidate-chunk) grid step.

    zpred_ref, zpos_ref: (T, F)     with T = tb * p rows (flattened batch x pos)
    zneg_ref:            (T, nc, F) one chunk of negatives per row
    out_ref:             (tb, p)    per-row loss (written on the last chunk)
    m_ref, s_ref:        (T, 1)     running max / running sum-of-exp scratch
    """
    j = pl.program_id(1)
    n_chunks = pl.num_programs(1)

    zpred = zpred_ref[...].astype(jnp.float32)                      # (T, F)

    # Positive logit: VPU multiply + lane reduce, f32 accumulation.
    zpos = zpos_ref[...].astype(jnp.float32)                        # (T, F)
    pos = jnp.sum(zpred * zpos, axis=-1, keepdims=True)             # (T, 1)

    @pl.when(j == 0)
    def _init():
        # Fold the positive in as the first "candidate": m = pos, sum = exp(0).
        m_ref[...] = pos
        s_ref[...] = jnp.ones_like(pos)

    # Negative logits for this candidate chunk (VPU mul + lane reduce).
    zneg = zneg_ref[...].astype(jnp.float32)                        # (T, nc, F)
    neg = jnp.sum(zpred[:, None, :] * zneg, axis=-1)                # (T, nc)

    if n_neg % nc != 0:
        # Ragged last chunk: mask candidates that fall outside [0, n_neg).
        cand = j * nc + jax.lax.broadcasted_iota(jnp.int32, neg.shape, 1)
        neg = jnp.where(cand < n_neg, neg, -jnp.inf)

    # Online logsumexp merge.
    m_prev = m_ref[...]
    m_new = jnp.maximum(m_prev, jnp.max(neg, axis=-1, keepdims=True))
    s_ref[...] = (s_ref[...] * jnp.exp(m_prev - m_new)
                  + jnp.sum(jnp.exp(neg - m_new), axis=-1, keepdims=True))
    m_ref[...] = m_new

    @pl.when(j == n_chunks - 1)
    def _finalize():
        # loss = logsumexp([pos, negs]) - pos  ==  -log_softmax(...)[..., 0]
        loss = m_ref[...] + jnp.log(s_ref[...]) - pos               # (T, 1)
        out_ref[...] = jnp.reshape(loss, (tb, p))


def _select_tiles(batch, p, n_neg, feat, itemsize):
    """Pick (TB, NC, vmem_limit): batch elements per step, negatives per chunk."""
    feat_p = pl.cdiv(feat, 128) * 128

    # Generation gate: 128 MiB VMEM on v5e/v6e, 64 MiB per TensorCore on v7x.
    try:
        vmem_cap = pltpu.get_tpu_info().vmem_capacity_bytes
    except Exception:  # no TPU info at trace time -> size for the smallest (v7x)
        vmem_cap = 64 * 1024 * 1024
    if vmem_cap >= 128 * 1024 * 1024:
        vmem_limit = 96 * 1024 * 1024
    else:
        vmem_limit = min(48 * 1024 * 1024, (vmem_cap * 3) // 4)
    budget = (vmem_limit * 3) // 5          # headroom for compiler temporaries

    def working_set(tb, nc):
        t = tb * p
        nc_p = max(pl.cdiv(nc, 8) * 8, 8)
        neg_blk = t * nc_p * feat_p * itemsize
        small_blk = 2 * t * feat_p * itemsize            # z_pred + z_pos blocks
        out_blk = tb * max(p, 128) * 4
        dma = 2 * (neg_blk + small_blk + out_blk)         # double-buffered pipeline
        # In-kernel f32 upcast / broadcast-product / exp intermediates.
        compute = (2 * t * nc_p * feat_p * 4 + 3 * t * feat_p * 4
                   + 4 * t * max(nc_p, 128) * 4)
        scratch = 2 * t * 128 * 4
        return dma + compute + scratch

    # Legal batch tiles: the full batch, or a multiple of 8 (output-tiling rule).
    if batch > 8:
        # Prefer >= 2 parallel grid steps so both v7x TensorCores get work.
        tb_candidates = list(range(((batch - 1) // 8) * 8, 0, -8))
    else:
        tb_candidates = [batch]

    # First choice: no candidate chunking, largest batch tile that fits.
    for tb in tb_candidates:
        if working_set(tb, n_neg) <= budget:
            return tb, n_neg, vmem_limit

    # Otherwise: smallest legal batch tile + chunk the negatives (online LSE).
    tb = tb_candidates[-1]
    nc_candidates = list(range((n_neg // 8) * 8, 0, -8)) or [n_neg]
    for nc in nc_candidates:
        if working_set(tb, nc) <= budget:
            return tb, nc, vmem_limit
    return tb, nc_candidates[-1], vmem_limit   # pathological F: smallest chunk


def infonce_loss(z_pred, z_neg, z_pos, pos_samples, neg_samples,
                 reduction="sum", tiles=None):
    """Pallas TPU implementation of InfoNCELoss.forward.

    z_pred: [B, P, F], z_neg: [B, P*N, F], z_pos: [B, P, F].
    Returns (total_loss, {'loss_per_future_step': [P]}) for reduction='sum'.
    Pass bf16 inputs for the bandwidth-optimal path; accumulation is f32.
    `tiles=(TB, NC)` optionally overrides the tile selection (testing).
    """
    if reduction != "sum":
        raise ValueError(f"Unsupported reduction: {reduction}")

    B, P, F = z_pred.shape
    N = neg_samples
    assert P == pos_samples
    assert z_pred.shape[0] == z_neg.shape[0] == z_pos.shape[0]
    assert z_pred.shape[-1] == z_neg.shape[-1] == z_pos.shape[-1]
    assert z_neg.shape[-2] == neg_samples * pos_samples
    assert z_pos.shape[-2] == pos_samples

    BP = B * P
    # Contiguous (free) reshapes only — no HBM concat/glue copies.
    z_pred_r = z_pred.reshape(BP, F)
    z_pos_r = z_pos.reshape(BP, F)
    z_neg_r = z_neg.reshape(BP, N, F)

    itemsize = jnp.dtype(z_pred.dtype).itemsize
    TB, NC, vmem_limit = _select_tiles(B, P, N, F, itemsize)
    if tiles is not None:
        TB, NC = tiles
    T = TB * P
    grid = (pl.cdiv(B, TB), pl.cdiv(N, NC))

    kernel = functools.partial(_infonce_kernel, tb=TB, p=P, nc=NC, n_neg=N)

    loss_bp = pl.pallas_call(
        kernel,
        out_shape=jax.ShapeDtypeStruct((B, P), jnp.float32),
        grid_spec=pltpu.PrefetchScalarGridSpec(
            num_scalar_prefetch=0,
            grid=grid,
            in_specs=[
                pl.BlockSpec((T, F), lambda i, j: (i, 0)),        # z_pred rows
                pl.BlockSpec((T, F), lambda i, j: (i, 0)),        # z_pos rows
                pl.BlockSpec((T, NC, F), lambda i, j: (i, j, 0)),  # z_neg chunk
            ],
            out_specs=pl.BlockSpec((TB, P), lambda i, j: (i, 0)),
            scratch_shapes=[
                pltpu.VMEM((T, 1), jnp.float32),   # running max
                pltpu.VMEM((T, 1), jnp.float32),   # running sum of exp
            ],
        ),
        compiler_params=pltpu.CompilerParams(
            dimension_semantics=("parallel", "arbitrary"),
            vmem_limit_bytes=int(vmem_limit),
        ),
    )(z_pred_r, z_pos_r, z_neg_r)                                   # (B, P) f32

    # Tiny final reductions in plain JAX (matches the PyTorch module).
    weighing = jnp.full((P,), 1.0 / P, dtype=jnp.float32)
    total_per_batch = jnp.sum(weighing * loss_bp, axis=-1)          # (B,)
    total_loss = jnp.sum(total_per_batch)                           # scalar
    loss_per_future_step = jnp.sum(loss_bp, axis=0)                 # (P,)
    return total_loss, {"loss_per_future_step": loss_per_future_step}


def _reference(zp, zn, zo, p, n):
    """Pure-JAX reference (same math as the PyTorch module), f32 throughout."""
    b, _, f = zp.shape
    zp = zp.astype(jnp.float32)
    zn = zn.astype(jnp.float32)
    zo = zo.astype(jnp.float32)
    pos = jnp.sum(zo * zp, axis=-1, keepdims=True)                    # (B,P,1)
    neg = jnp.einsum("bpf,bpnf->bpn", zp, zn.reshape(b, p, n, f))     # (B,P,N)
    logits = jnp.concatenate([pos, neg], axis=-1)
    loss_bp = -jax.nn.log_softmax(logits, axis=-1)[..., 0]            # (B,P)
    total = jnp.sum(jnp.sum(jnp.full((p,), 1.0 / p) * loss_bp, axis=-1))
    return total, jnp.sum(loss_bp, axis=0)


if __name__ == "__main__":
    key = jax.random.PRNGKey(0)

    # Case 1: default tiling, f32 and bf16 (bandwidth-optimal) input paths.
    B, P, N, F = 2, 8, 4, 32
    k1, k2, k3 = jax.random.split(key, 3)
    z_pred32 = jax.random.normal(k1, (B, P, F), dtype=jnp.float32)
    z_neg32 = jax.random.normal(k2, (B, P * N, F), dtype=jnp.float32)
    z_pos32 = jax.random.normal(k3, (B, P, F), dtype=jnp.float32)

    for dtype in (jnp.float32, jnp.bfloat16):
        zp = z_pred32.astype(dtype)
        zn = z_neg32.astype(dtype)
        zo = z_pos32.astype(dtype)
        total_loss, extra = infonce_loss(zp, zn, zo, pos_samples=P, neg_samples=N)
        total_loss = jax.block_until_ready(total_loss)
        per_step = jax.block_until_ready(extra["loss_per_future_step"])
        ref_total, ref_per_step = _reference(zp, zn, zo, P, N)
        assert per_step.shape == (P,)
        assert bool(jnp.isfinite(total_loss))
        assert jnp.allclose(total_loss, ref_total, rtol=1e-3, atol=1e-2), dtype
        assert jnp.allclose(per_step, ref_per_step, rtol=1e-3, atol=1e-2), dtype

    # Case 2: force candidate chunking (online logsumexp + ragged-chunk mask).
    B2, P2, N2, F2 = 2, 4, 12, 32
    k4, k5, k6 = jax.random.split(jax.random.PRNGKey(1), 3)
    zp2 = jax.random.normal(k4, (B2, P2, F2), dtype=jnp.float32)
    zn2 = jax.random.normal(k5, (B2, P2 * N2, F2), dtype=jnp.float32)
    zo2 = jax.random.normal(k6, (B2, P2, F2), dtype=jnp.float32)
    total2, extra2 = infonce_loss(zp2, zn2, zo2, pos_samples=P2, neg_samples=N2,
                                  tiles=(2, 8))           # 2 chunks, last ragged
    total2 = jax.block_until_ready(total2)
    per_step2 = jax.block_until_ready(extra2["loss_per_future_step"])
    ref_total2, ref_per_step2 = _reference(zp2, zn2, zo2, P2, N2)
    assert jnp.allclose(total2, ref_total2, rtol=1e-3, atol=1e-2)
    assert jnp.allclose(per_step2, ref_per_step2, rtol=1e-3, atol=1e-2)

    print("KERNEL_OK")
</pallas_src>

<mosaic_0001>
module attributes {stable_mosaic.version = 11 : i64} {
  func.func @_infonce_kernel(%arg0: i32, %arg1: i32, %arg2: memref<16x32xf32, #tpu.memory_space<vmem>>, %arg3: memref<16x32xf32, #tpu.memory_space<vmem>>, %arg4: memref<16x4x32xf32, #tpu.memory_space<vmem>>, %arg5: memref<2x8xf32, #tpu.memory_space<vmem>>, %arg6: memref<16x1xf32, #tpu.memory_space<vmem>>, %arg7: memref<16x1xf32, #tpu.memory_space<vmem>>) attributes {dimension_semantics = [#tpu.dimension_semantics<parallel>, #tpu.dimension_semantics<arbitrary>], iteration_bounds = array<i64: 1, 1>, scalar_prefetch = 0 : i64, scratch_operands = 2 : i64, tpu.core_type = #tpu.core_type<tc>, window_params = [{transform_indices = @transform_0, window_bounds = array<i64: 16, 32>}, {transform_indices = @transform_1, window_bounds = array<i64: 16, 32>}, {transform_indices = @transform_2, window_bounds = array<i64: 16, 4, 32>}, {transform_indices = @transform_3, window_bounds = array<i64: 2, 8>}]} {
    %c0 = arith.constant 0 : index
    %c0_0 = arith.constant 0 : index
    %0 = vector.load %arg2[%c0, %c0_0] : memref<16x32xf32, #tpu.memory_space<vmem>>, vector<16x32xf32>
    %c0_1 = arith.constant 0 : index
    %c0_2 = arith.constant 0 : index
    %1 = vector.load %arg3[%c0_1, %c0_2] : memref<16x32xf32, #tpu.memory_space<vmem>>, vector<16x32xf32>
    %2 = arith.mulf %0, %1 : vector<16x32xf32>
    %cst = arith.constant dense<0.000000e+00> : vector<16xf32>
    %3 = vector.multi_reduction <add>, %2, %cst [1] : vector<16x32xf32> to vector<16xf32>
    %4 = vector.shape_cast %3 : vector<16xf32> to vector<16x1xf32>
    %c0_i32 = arith.constant 0 : i32
    %5 = arith.cmpi eq, %arg1, %c0_i32 : i32
    %6 = arith.extui %5 : i1 to i32
    %c0_i32_3 = arith.constant 0 : i32
    %7 = arith.cmpi ne, %6, %c0_i32_3 : i32
    scf.if %7 {
      %c0_20 = arith.constant 0 : index
      %c0_21 = arith.constant 0 : index
      %32 = vector.load %arg6[%c0_20, %c0_21] : memref<16x1xf32, #tpu.memory_space<vmem>>, vector<16x1xf32>
      tpu.vector_store %arg6[%c0_20, %c0_21], %4 {strides = array<i32>} : memref<16x1xf32, #tpu.memory_space<vmem>>, vector<16x1xf32>,
      %cst_22 = arith.constant 1.000000e+00 : f32
      %33 = vector.broadcast %cst_22 : f32 to vector<16x1xf32>
      %c0_23 = arith.constant 0 : index
      %c0_24 = arith.constant 0 : index
      %34 = vector.load %arg7[%c0_23, %c0_24] : memref<16x1xf32, #tpu.memory_space<vmem>>, vector<16x1xf32>
      tpu.vector_store %arg7[%c0_23, %c0_24], %33 {strides = array<i32>} : memref<16x1xf32, #tpu.memory_space<vmem>>, vector<16x1xf32>,
    } else {
    }
    %c0_4 = arith.constant 0 : index
    %c0_5 = arith.constant 0 : index
    %c0_6 = arith.constant 0 : index
    %8 = vector.load %arg4[%c0_4, %c0_5, %c0_6] : memref<16x4x32xf32, #tpu.memory_space<vmem>>, vector<16x4x32xf32>
    %9 = vector.shape_cast %0 : vector<16x32xf32> to vector<16x1x32xf32>
    %10 = vector.broadcast %9 : vector<16x1x32xf32> to vector<16x4x32xf32>
    %11 = arith.mulf %10, %8 : vector<16x4x32xf32>
    %cst_7 = arith.constant dense<0.000000e+00> : vector<16x4xf32>
    %12 = vector.multi_reduction <add>, %11, %cst_7 [2] : vector<16x4x32xf32> to vector<16x4xf32>
    %c0_8 = arith.constant 0 : index
    %c0_9 = arith.constant 0 : index
    %13 = vector.load %arg6[%c0_8, %c0_9] : memref<16x1xf32, #tpu.memory_space<vmem>>, vector<16x1xf32>
    %cst_10 = arith.constant dense<0xFF800000> : vector<16xf32>
    %14 = vector.multi_reduction <maximumf>, %12, %cst_10 [1] : vector<16x4xf32> to vector<16xf32>
    %15 = vector.shape_cast %14 : vector<16xf32> to vector<16x1xf32>
    %16 = arith.maximumf %13, %15 : vector<16x1xf32>
    %c0_11 = arith.constant 0 : index
    %c0_12 = arith.constant 0 : index
    %17 = vector.load %arg7[%c0_11, %c0_12] : memref<16x1xf32, #tpu.memory_space<vmem>>, vector<16x1xf32>
    %18 = arith.subf %13, %16 : vector<16x1xf32>
    %19 = math.exp %18 : vector<16x1xf32>
    %20 = arith.mulf %17, %19 : vector<16x1xf32>
    %21 = vector.broadcast %16 : vector<16x1xf32> to vector<16x4xf32>
    %22 = arith.subf %12, %21 : vector<16x4xf32>
    %23 = math.exp %22 : vector<16x4xf32>
    %cst_13 = arith.constant dense<0.000000e+00> : vector<16xf32>
    %24 = vector.multi_reduction <add>, %23, %cst_13 [1] : vector<16x4xf32> to vector<16xf32>
    %25 = vector.shape_cast %24 : vector<16xf32> to vector<16x1xf32>
    %26 = arith.addf %20, %25 : vector<16x1xf32>
    %c0_14 = arith.constant 0 : index
    %c0_15 = arith.constant 0 : index
    %27 = vector.load %arg7[%c0_14, %c0_15] : memref<16x1xf32, #tpu.memory_space<vmem>>, vector<16x1xf32>
    tpu.vector_store %arg7[%c0_14, %c0_15], %26 {strides = array<i32>} : memref<16x1xf32, #tpu.memory_space<vmem>>, vector<16x1xf32>,
    %c0_16 = arith.constant 0 : index
    %c0_17 = arith.constant 0 : index
    %28 = vector.load %arg6[%c0_16, %c0_17] : memref<16x1xf32, #tpu.memory_space<vmem>>, vector<16x1xf32>
    tpu.vector_store %arg6[%c0_16, %c0_17], %16 {strides = array<i32>} : memref<16x1xf32, #tpu.memory_space<vmem>>, vector<16x1xf32>,
    %c0_i32_18 = arith.constant 0 : i32
    %29 = arith.cmpi eq, %arg1, %c0_i32_18 : i32
    %30 = arith.extui %29 : i1 to i32
    %c0_i32_19 = arith.constant 0 : i32
    %31 = arith.cmpi ne, %30, %c0_i32_19 : i32
    scf.if %31 {
      %c0_20 = arith.constant 0 : index
      %c0_21 = arith.constant 0 : index
      %32 = vector.load %arg6[%c0_20, %c0_21] : memref<16x1xf32, #tpu.memory_space<vmem>>, vector<16x1xf32>
      %c0_22 = arith.constant 0 : index
      %c0_23 = arith.constant 0 : index
      %33 = vector.load %arg7[%c0_22, %c0_23] : memref<16x1xf32, #tpu.memory_space<vmem>>, vector<16x1xf32>
      %34 = math.log %33 : vector<16x1xf32>
      %35 = arith.addf %32, %34 : vector<16x1xf32>
      %36 = arith.subf %35, %4 : vector<16x1xf32>
      %37 = vector.shape_cast %36 : vector<16x1xf32> to vector<2x8xf32>
      %c0_24 = arith.constant 0 : index
      %c0_25 = arith.constant 0 : index
      %38 = vector.load %arg5[%c0_24, %c0_25] : memref<2x8xf32, #tpu.memory_space<vmem>>, vector<2x8xf32>
      tpu.vector_store %arg5[%c0_24, %c0_25], %37 {strides = array<i32>} : memref<2x8xf32, #tpu.memory_space<vmem>>, vector<2x8xf32>,
    } else {
    }
    return
  }
  func.func @transform_0(%arg0: i32, %arg1: i32) -> (i32, i32) {
    %c0_i32 = arith.constant 0 : i32
    %c0_i32_0 = arith.constant 0 : i32
    return %arg0, %c0_i32 : i32, i32
  }
  func.func @transform_1(%arg0: i32, %arg1: i32) -> (i32, i32) {
    %c0_i32 = arith.constant 0 : i32
    %c0_i32_0 = arith.constant 0 : i32
    return %arg0, %c0_i32 : i32, i32
  }
  func.func @transform_2(%arg0: i32, %arg1: i32) -> (i32, i32, i32) {
    %c0_i32 = arith.constant 0 : i32
    %c0_i32_0 = arith.constant 0 : i32
    return %arg0, %arg1, %c0_i32 : i32, i32, i32
  }
  func.func @transform_3(%arg0: i32, %arg1: i32) -> (i32, i32) {
    %c0_i32 = arith.constant 0 : i32
    %c0_i32_0 = arith.constant 0 : i32
    return %arg0, %c0_i32 : i32, i32
  }
}

</mosaic_0001>

<bundles_post_ra>
// kernel: tpu_custom_call.1
= control target key start
LH: loop header
LB: loop body
LE: loop exit
PB: predicated region body
PF: predicated region fallthrough
CT: control target
= control target key end

     0   :  { %8 = vsyncpa [#allocation5], 0  ;;  %s963_s0 = inlined_call_operand.hbm [shape: f32[16,32], index: 0, kind: input, shape index: {}]   ;;  %s964_s1 = inlined_call_operand.hbm [shape: f32[16,32], index: 1, kind: input, shape index: {}]   ;;  %s965_s2 = inlined_call_operand.hbm [shape: f32[16,4,32], index: 2, kind: input, shape index: {}]   ;;  %s966_s3 = inlined_call_operand.hbm [shape: f32[2,8], index: 3, kind: output, shape index: {}]  }
   0x1   :  { %9 = vsyncpa [#allocation8], 0 }
   0x2   :  { %10 = vsyncpa [#allocation6], 0  ;;  %s28_s14 = sshll.u32 %s964_s1, 4  ;;  %s690_s15 = smov [#allocation7]   ;;  %s29_s14 = int_to_ptr.hbm [resolvable:$true] %s28_s14 }
   0x3   :  { %s30_s16 = sshll.u32 %s690_s15, 4  ;;  %s15_s19 = sshll.u32 %s963_s0, 4  ;;  %s31_s16 = int_to_ptr.vmem [resolvable:$true] %s30_s16  ;;  %s16_s19 = int_to_ptr.hbm [resolvable:$true] %s15_s19 }
   0x4   :  { %s691_s20 = smov 128   ;;  %s692_s21 = smov 8  }
   0x5   :  { %36 = dma.hbm_to_vmem [thread:$0]  %s29_s14, 256, %s31_s16, [#allocation8], %s691_s20, %s691_s20, %s692_s21  }
   0x6   :  { %s693_s22 = smov [#allocation4]   ;;  %s41_s26 = sshll.u32 %s965_s2, 4  ;;  %s42_s26 = int_to_ptr.hbm [resolvable:$true] %s41_s26 }
   0x7   :  { %s17_s23 = sshll.u32 %s693_s22, 4  ;;  %s694_s1 = smov [#allocation9]   ;;  %s18_s23 = int_to_ptr.vmem [resolvable:$true] %s17_s23 }
   0x8   :  { %23 = dma.hbm_to_vmem [thread:$0]  %s16_s19, 256, %s18_s23, [#allocation5], %s691_s20, %s691_s20, %s692_s21  }
   0x9   :  { %s43_s27 = sshll.u32 %s694_s1, 4  ;;  %s695_s28 = smov 64   ;;  %s44_s27 = int_to_ptr.vmem [resolvable:$true] %s43_s27 }
   0xa   :  { %s696_s29 = smov 4  }
   0xb   :  { %49 = dma.hbm_to_vmem [thread:$0]  %s42_s26, 1024, %s44_s27, [#allocation8], %s695_s28, %s695_s28, %s696_s29  }
   0xc   :  { %684 = dma.done.wait [#allocation5], 256  }
   0xd   :  { %685 = vsyncadd [#allocation5], 4294967040 }
   0xe   :  { %686 = dma.done.wait [#allocation8], 1280  }
   0xf   :  { %687 = vsyncadd [#allocation8], 4294966016  ;;  %v729_v0 = vld [vmem:[#allocation4 + $0x8] sm:$0xff]  ;;  %v92_v1 = vld [vmem:[#allocation9 + $0x20] sm:$0xf]  ;;  %vm164_vm0 = vcmask 257024  }
  0x10   :  { %v731_v2 = vld [vmem:[#allocation4] sm:$0xff]  ;;  %v124_v3 = vperm.slane %v729_v0, 0  ;;  %v109_v7 = vrot.slane %v729_v0, 1  ;;  %v86_v10 = vld [vmem:[#allocation9 + $0x8] sm:$0xf]  ;;  %v110_v12 = vrot.slane %v729_v0, 2 }
  0x11   :  { %v84_v4 = vld [vmem:[#allocation9] sm:$0xf]  ;;  %v116_v5 = vperm.slane %v731_v2, 0  ;;  %v103_v6 = vrot.slane %v731_v2, 2  ;;  %v102_v11 = vrot.slane %v731_v2, 1  ;;  %v111_v25 = vrot.slane %v729_v0, 3 }
  0x12   :  { %v156_v8 = vmul.f32 %v124_v3, %v92_v1  ;;  %v93_v14 = vld [vmem:[#allocation9 + $0x24] sm:$0xf]  ;;  %v125_v15 = vperm.slane %v109_v7, 0  ;;  %v126_v21 = vperm.slane %v110_v12, 0  ;;  %v94_v24 = vld [vmem:[#allocation9 + $0x28] sm:$0xf] }
  0x13   :  { %v148_v9 = vmul.f32 %v116_v5, %v84_v4  ;;  %v118_v13 = vperm.slane %v103_v6, 0  ;;  %v85_v16 = vld [vmem:[#allocation9 + $0x4] sm:$0xf]  ;;  %v117_v19 = vperm.slane %v102_v11, 0  ;;  %v104_v26 = vrot.slane %v731_v2, 3  ;;  %s699_s0 = smov [#allocation10]  }
  0x14   :  { %v189_v17 = vsel %vm164_vm0, %v156_v8, 0.0  ;;  %v157_v22 = vmul.f32 %v125_v15, %v93_v14  ;;  %v158_v28 = vmul.f32 %v126_v21, %v94_v24  ;;  %v105_v29 = vrot.slane %v731_v2, 4  ;;  %v95_v34 = vld [vmem:[#allocation9 + $0x2c] sm:$0xf]  ;;  %v88_v40 = vld [vmem:[#allocation9 + $0x10] sm:$0xf] }
  0x15   :  { %v165_v18 = vsel %vm164_vm0, %v148_v9, 0.0  ;;  %190 = vadd.xlane.f32.xlu1 %v189_v17  ;;  %v150_v20 = vmul.f32 %v118_v13, %v86_v10  ;;  %v149_v23 = vmul.f32 %v117_v19, %v85_v16  ;;  %v127_v32 = vperm.slane %v111_v25, 0  ;;  %v87_v35 = vld [vmem:[#allocation9 + $0xc] sm:$0xf]  ;;  %v89_v49 = vld [vmem:[#allocation9 + $0x14] sm:$0xf] }
  0x16   :  { %166 = vadd.xlane.f32.xlu0 %v165_v18  ;;  %v192_v30 = vsel %vm164_vm0, %v157_v22, 0.0  ;;  %v119_v33 = vperm.slane %v104_v26, 0  ;;  %v195_v36 = vsel %vm164_vm0, %v158_v28, 0.0  ;;  %v120_v37 = vperm.slane %v105_v29, 0  ;;  %v96_v50 = vld [vmem:[#allocation9 + $0x30] sm:$0xf] }
  0x17   :  { %v171_v27 = vsel %vm164_vm0, %v150_v20, 0.0  ;;  %v168_v31 = vsel %vm164_vm0, %v149_v23, 0.0  ;;  %v159_v38 = vmul.f32 %v127_v32, %v95_v34  ;;  %v106_v41 = vrot.slane %v731_v2, 5  ;;  %v97_v55 = vld [vmem:[#allocation9 + $0x34] sm:$0xf]  ;;  %v65_v23 = vld [vmem:[#allocation7 + $0x8] sm:$0xff] }
  0x18   :  { %172 = vadd.xlane.f32.xlu2 %v171_v27  ;;  %v151_v39 = vmul.f32 %v119_v33, %v87_v35  ;;  %v112_v42 = vrot.slane %v729_v0, 4  ;;  %v152_v43 = vmul.f32 %v120_v37, %v88_v40  ;;  %v113_v44 = vrot.slane %v729_v0, 5  ;;  %v98_v1 = vld [vmem:[#allocation9 + $0x38] sm:$0xf]  ;;  %v91_v8 = vld [vmem:[#allocation9 + $0x1c] sm:$0xf] }
  0x19   :  { %v198_v45 = vsel %vm164_vm0, %v159_v38, 0.0  ;;  %v121_v47 = vperm.slane %v106_v41, 0  ;;  %v114_v56 = vrot.slane %v729_v0, 6  ;;  %v107_v57 = vrot.slane %v731_v2, 6  ;;  %v90_v3 = vld [vmem:[#allocation9 + $0x18] sm:$0xf] }
  0x1a   :  { %v174_v46 = vsel %vm164_vm0, %v151_v39, 0.0  ;;  %v128_v48 = vperm.slane %v112_v42, 0  ;;  %v177_v51 = vsel %vm164_vm0, %v152_v43, 0.0  ;;  %v129_v52 = vperm.slane %v113_v44, 0  ;;  %v99_v14 = vld [vmem:[#allocation9 + $0x3c] sm:$0xf] }
  0x1b   :  { %v153_v53 = vmul.f32 %v121_v47, %v89_v49  ;;  %v108_v59 = vrot.slane %v731_v2, 7  ;;  %v130_v62 = vperm.slane %v114_v56, 0  ;;  %v122_v63 = vperm.slane %v107_v57, 0  ;;  %v64_v18 = vld [vmem:[#allocation7] sm:$0xff]  ;;  %s522_s2 = sshll.u32 %s699_s0, 4  ;;  %s524_s5 = sshll.u32 %s966_s3, 4  ;;  %s523_s2 = int_to_ptr.vmem [resolvable:$true] %s522_s2  ;;  %s525_s5 = int_to_ptr.hbm [resolvable:$true] %s524_s5 }
  0x1c   :  { %v160_v54 = vmul.f32 %v128_v48, %v96_v50  ;;  %v161_v58 = vmul.f32 %v129_v52, %v97_v55  ;;  %v115_v9 = vrot.slane %v729_v0, 7  ;;  %vm68_vm1 = vcmask 261120  }
  0x1d   :  { %193 = vadd.xlane.f32.xlu1 %v192_v30  ;;  %v180_v60 = vsel %vm164_vm0, %v153_v53, 0.0  ;;  %v123_v5 = vperm.slane %v108_v59, 0  ;;  %v162_v6 = vmul.f32 %v130_v62, %v98_v1  ;;  %v154_v7 = vmul.f32 %v122_v63, %v90_v3 }
  0x1e   :  { %169 = vadd.xlane.f32.xlu0 %v168_v31  ;;  %v201_v61 = vsel %vm164_vm0, %v160_v54, 0.0  ;;  %v204_v4 = vsel %vm164_vm0, %v161_v58, 0.0  ;;  %v131_v13 = vperm.slane %v115_v9, 0  ;;  %v66_v19 = vmul.f32 %v64_v18, %v731_v2 }
  0x1f   :  { %v155_v10 = vmul.f32 %v123_v5, %v91_v8  ;;  %v207_v11 = vsel %vm164_vm0, %v162_v6, 0.0  ;;  %v183_v12 = vsel %vm164_vm0, %v154_v7, 0.0  ;;  %v67_v25 = vmul.f32 %v65_v23, %v729_v0 }
  0x20   :  { %196 = vadd.xlane.f32.xlu2 %v195_v36  ;;  %v163_v16 = vmul.f32 %v131_v13, %v99_v14  ;;  %v69_v20 = vsel %vm68_vm1, %v66_v19, 0.0  ;;  %v231_v2 = vlaneseq  ;;  %vm249_vm2 = vcmask 1041409  }
  0x21   :  { %v186_v15 = vsel %vm164_vm0, %v155_v10, 0.0  ;;  %v72_v26 = vsel %vm68_vm1, %v67_v25, 0.0  ;;  %vm251_vm3 = vcmask 1042434   ;;  %vm253_vm4 = vcmask 1043459  }
  0x22   :  { %v210_v17 = vsel %vm164_vm0, %v163_v16, 0.0  ;;  %v785_v33 = vand.u32 127, %v231_v2  ;;  %vm255_vm5 = vcmask 1044484   ;;  %vm257_vm6 = vcmask 1045509  }
  0x23   :  { %vm259_vm7 = vcmask 1046534   ;;  %vm261_vm8 = vcmask 1047559   ;;  %vm272_vm9 = vcmask 31744   ;;  %vm79_vm10 = vcmask 7168  }
  0x24   :  { %v698_v13 = vmov 1.0   ;;  %vm515_vm11 = vcmask 58368  }
  0x25   :  { %199 = vadd.xlane.f32.xlu1 %v198_v45  ;;  %83 = vst.msk [vmem:[#allocation3 + $0x8] sm:$0xff] %vm79_vm10, %v698_v13 }
  0x26   :  { %175 = vadd.xlane.f32.xlu0 %v174_v46  ;;  %82 = vst.msk [vmem:[#allocation3] sm:$0xff] %vm79_vm10, %v698_v13 }
  0x28   :  { %178 = vadd.xlane.f32.xlu2 %v177_v51 }
  0x2d   :  { %181 = vadd.xlane.f32.xlu1 %v180_v60 }
  0x2e   :  { %202 = vadd.xlane.f32.xlu0 %v201_v61 }
  0x30   :  { %205 = vadd.xlane.f32.xlu2 %v204_v4 }
  0x35   :  { %208 = vadd.xlane.f32.xlu1 %v207_v11 }
  0x36   :  { %184 = vadd.xlane.f32.xlu0 %v183_v12  ;;  %v697_v12 = vmov 0  }
  0x37   :  { %545 = vset.pattern.permute.xlu2 %v697_v12  ;;  %546 = vset.pattern.permute.xlu0 %v697_v12 }
  0x38   :  { %187 = vadd.xlane.f32.xlu2 %v186_v15  ;;  %547 = vset.pattern.permute.xlu1 %v697_v12 }
  0x3d   :  { %70 = vadd.xlane.f32.xlu1 %v69_v20 }
  0x3e   :  { %211 = vadd.xlane.f32.xlu0 %v210_v17 }
  0x40   :  { %73 = vadd.xlane.f32.xlu2 %v72_v26 }
  0x88   :  { %v766_v21 = vpop.xlane.xlu1 %190 }
  0x89   :  { %v768_v22 = vpop.xlane.xlu0 %166  ;;  %v241_v41 = vperm.slane %v766_v21, %v785_v33 }
  0x8a   :  { %v233_v34 = vperm.slane %v768_v22, %v785_v33 }
  0x8b   :  { %v770_v24 = vpop.xlane.xlu2 %172 }
  0x8c   :  { %v235_v36 = vperm.slane %v770_v24, %v785_v33 }
  0x90   :  { %v773_v27 = vpop.xlane.xlu1 %193 }
  0x91   :  { %v775_v28 = vpop.xlane.xlu0 %169  ;;  %v242_v42 = vperm.slane %v773_v27, %v785_v33 }
  0x92   :  { %v234_v0 = vperm.slane %v775_v28, %v785_v33 }
  0x93   :  { %v777_v29 = vpop.xlane.xlu2 %196  ;;  %v263_v49 = vsel %vm249_vm2, %v242_v42, %v241_v41 }
  0x94   :  { %v250_v38 = vsel %vm249_vm2, %v234_v0, %v233_v34  ;;  %v243_v47 = vperm.slane %v777_v29, %v785_v33 }
  0x95   :  { %v252_v43 = vsel %vm251_vm3, %v235_v36, %v250_v38 }
  0x96   :  { %v264_v58 = vsel %vm251_vm3, %v243_v47, %v263_v49 }
  0x98   :  { %v779_v30 = vpop.xlane.xlu1 %199 }
  0x99   :  { %v781_v31 = vpop.xlane.xlu0 %175  ;;  %v244_v50 = vperm.slane %v779_v30, %v785_v33 }
  0x9a   :  { %v236_v39 = vperm.slane %v781_v31, %v785_v33 }
  0x9b   :  { %v783_v32 = vpop.xlane.xlu2 %178  ;;  %v265_v60 = vsel %vm253_vm4, %v244_v50, %v264_v58 }
  0x9c   :  { %v237_v44 = vperm.slane %v783_v32, %v785_v33  ;;  %v254_v45 = vsel %vm253_vm4, %v236_v39, %v252_v43 }
  0x9e   :  { %v256_v51 = vsel %vm255_vm5, %v237_v44, %v254_v45 }
  0xa0   :  { %v795_v37 = vpop.xlane.xlu1 %181 }
  0xa1   :  { %v791_v35 = vpop.xlane.xlu0 %202  ;;  %v238_v46 = vperm.slane %v795_v37, %v785_v33 }
  0xa2   :  { %v245_v53 = vperm.slane %v791_v35, %v785_v33 }
  0xa3   :  { %v800_v40 = vpop.xlane.xlu2 %205  ;;  %v258_v54 = vsel %vm257_vm6, %v238_v46, %v256_v51 }
  0xa4   :  { %v246_v61 = vperm.slane %v800_v40, %v785_v33  ;;  %v266_v62 = vsel %vm255_vm5, %v245_v53, %v265_v60 }
  0xa6   :  { %v267_v6 = vsel %vm257_vm6, %v246_v61, %v266_v62 }
  0xa8   :  { %v825_v55 = vpop.xlane.xlu1 %208 }
  0xa9   :  { %v814_v48 = vpop.xlane.xlu0 %184  ;;  %v247_v63 = vperm.slane %v825_v55, %v785_v33 }
  0xaa   :  { %v239_v52 = vperm.slane %v814_v48, %v785_v33 }
  0xab   :  { %v827_v56 = vpop.xlane.xlu2 %187  ;;  %v268_v7 = vsel %vm259_vm7, %v247_v63, %v267_v6 }
  0xac   :  { %v260_v57 = vsel %vm259_vm7, %v239_v52, %v258_v54  ;;  %v240_v59 = vperm.slane %v827_v56, %v785_v33 }
  0xae   :  { %v262_v1 = vsel %vm261_vm8, %v240_v59, %v260_v57 }
  0xaf   :  { %v273_v3 = vsel %vm272_vm9, %v262_v1, -inf }
  0xb0   :  { %274 = vmax.xlane.f32.xlu0 %v273_v3  ;;  %v849_v10 = vpop.xlane.xlu1 %70 }
  0xb1   :  { %v841_v4 = vpop.xlane.xlu0 %211  ;;  %80 = vst.msk [vmem:[#allocation2] sm:$0xff] %vm79_vm10, %v849_v10 }
  0xb2   :  { %v248_v5 = vperm.slane %v841_v4, %v785_v33 }
  0xb3   :  { %v853_v11 = vpop.xlane.xlu2 %73 }
  0xb4   :  { %v269_v8 = vsel %vm261_vm8, %v248_v5, %v268_v7  ;;  %81 = vst.msk [vmem:[#allocation2 + $0x8] sm:$0xff] %vm79_vm10, %v853_v11 }
  0xb5   :  { %v276_v9 = vsel %vm272_vm9, %v269_v8, -inf }
  0xb6   :  { %277 = vmax.xlane.f32.xlu1 %v276_v9 }
  0xb8   :  { %v859_v14 = vld [vmem:[#allocation2] sm:$0xff] }
  0xbb   :  { %v869_v18 = vld [vmem:[#allocation2 + $0x8] sm:$0xff] }
 0x123   :  { %v275_v15 = vpop.xlane.xlu0 %274 }
 0x124   :  { %v862_v16 = vmax.f32 %v859_v14, %v275_v15 }
 0x126   :  { %v283_v17 = vsub.f32 %v859_v14, %v862_v16  ;;  %486 = vst.msk [vmem:[#allocation2] sm:$0xff] %vm79_vm10, %v862_v16  ;;  %293 = vperm.xlu2 %545, %v862_v16  }
 0x129   :  { %v278_v19 = vpop.xlane.xlu1 %277 }
 0x12a   :  { %v872_v20 = vmax.f32 %v869_v18, %v278_v19 }
 0x12c   :  { %v284_v23 = vsub.f32 %v869_v18, %v872_v20  ;;  %487 = vst.msk [vmem:[#allocation2 + $0x8] sm:$0xff] %vm79_vm10, %v872_v20  ;;  %297 = vperm.xlu0 %546, %v872_v20  }
 0x180   :  { %v879_v25 = vpop.permute.xlu2 %293 }
 0x181   :  { %v300_v26 = vperm.slane %v879_v25, 1  ;;  %v299_v2 = vperm.slane %v879_v25, 0  ;;  %v302_v0 = vperm.slane %v879_v25, 3  ;;  %v305_v51 = vperm.slane %v879_v25, 6 }
 0x182   :  { %v301_v53 = vperm.slane %v879_v25, 2  ;;  %v303_v62 = vperm.slane %v879_v25, 4  ;;  %v304_v15 = vperm.slane %v879_v25, 5 }
 0x183   :  { %v332_v34 = vsub.f32 %v775_v28, %v300_v26  ;;  %v331_v36 = vsub.f32 %v768_v22, %v299_v2  ;;  %v334_v38 = vsub.f32 %v781_v31, %v302_v0  ;;  %v337_v59 = vsub.f32 %v814_v48, %v305_v51 }
 0x184   :  { %v306_v2 = vperm.slane %v879_v25, 7 }
 0x185   :  { %v349_v39 = vmul.f32 1.442695, %v332_v34  ;;  %v347_v41 = vmul.f32 1.442695, %v331_v36  ;;  %v353_v42 = vmul.f32 1.442695, %v334_v38 }
 0x187   :  { %548 = vpow2.f32 %v349_v39 }
 0x188   :  { %550 = vpow2.f32 %v347_v41  ;;  %v338_v41 = vsub.f32 %v827_v56, %v306_v2 }
 0x189   :  { %552 = vpow2.f32 %v353_v42 }
 0x18a   :  { %v361_v42 = vmul.f32 1.442695, %v338_v41 }
 0x18d   :  { %v549_v43 = vpop.eup %548 }
 0x18e   :  { %v551_v44 = vpop.eup %550  ;;  %399 = vperm.xlu2 %545, %v549_v43  }
 0x18f   :  { %v553_v45 = vpop.eup %552  ;;  %396 = vperm.xlu1 %547, %v551_v44  }
 0x190   :  { %405 = vperm.xlu0 %546, %v553_v45  }
 0x19e   :  { %v887_v46 = vpop.permute.xlu0 %297 }
 0x19f   :  { %v311_v28 = vperm.slane %v887_v46, 4  ;;  %v308_v22 = vperm.slane %v887_v46, 1  ;;  %v307_v31 = vperm.slane %v887_v46, 0  ;;  %v309_v52 = vperm.slane %v887_v46, 2 }
 0x1a0   :  { %v310_v3 = vperm.slane %v887_v46, 3  ;;  %v312_v9 = vperm.slane %v887_v46, 5  ;;  %v313_v36 = vperm.slane %v887_v46, 6 }
 0x1a1   :  { %v343_v47 = vsub.f32 %v791_v35, %v311_v28  ;;  %v340_v49 = vsub.f32 %v773_v27, %v308_v22  ;;  %v339_v50 = vsub.f32 %v766_v21, %v307_v31  ;;  %v341_v60 = vsub.f32 %v777_v29, %v309_v52 }
 0x1a2   :  { %v333_v27 = vsub.f32 %v770_v24, %v301_v53  ;;  %v359_v35 = vmul.f32 1.442695, %v337_v59  ;;  %v314_v21 = vperm.slane %v887_v46, 7  ;;  %v335_v24 = vsub.f32 %v783_v32, %v303_v62 }
 0x1a3   :  { %v371_v54 = vmul.f32 1.442695, %v343_v47  ;;  %v365_v57 = vmul.f32 1.442695, %v340_v49  ;;  %v363_v58 = vmul.f32 1.442695, %v339_v50  ;;  %v342_v48 = vsub.f32 %v779_v30, %v310_v3 }
 0x1a4   :  { %v367_v61 = vmul.f32 1.442695, %v341_v60  ;;  %v351_v1 = vmul.f32 1.442695, %v333_v27  ;;  %v346_v29 = vsub.f32 %v841_v4, %v314_v21  ;;  %v355_v8 = vmul.f32 1.442695, %v335_v24 }
 0x1a5   :  { %554 = vpow2.f32 %v371_v54  ;;  %v369_v13 = vmul.f32 1.442695, %v342_v48  ;;  %v344_v32 = vsub.f32 %v800_v40, %v312_v9  ;;  %v336_v30 = vsub.f32 %v795_v37, %v304_v15 }
 0x1a6   :  { %556 = vpow2.f32 %v365_v57  ;;  %v377_v7 = vmul.f32 1.442695, %v346_v29  ;;  %v345_v40 = vsub.f32 %v825_v55, %v313_v36 }
 0x1a7   :  { %558 = vpow2.f32 %v363_v58  ;;  %v373_v4 = vmul.f32 1.442695, %v344_v32  ;;  %v357_v34 = vmul.f32 1.442695, %v336_v30 }
 0x1a8   :  { %560 = vpow2.f32 %v359_v35  ;;  %v375_v37 = vmul.f32 1.442695, %v345_v40  ;;  %v287_v40 = vmul.f32 1.442695, %v284_v23  ;;  %v491_v23 = vld [vmem:[#allocation2] sm:$0xff] }
 0x1a9   :  { %562 = vpow2.f32 %v367_v61 }
 0x1aa   :  { %564 = vpow2.f32 %v351_v1 }
 0x1ab   :  { %v555_v63 = vpop.eup %554  ;;  %566 = vpow2.f32 %v377_v7 }
 0x1ac   :  { %v557_v5 = vpop.eup %556  ;;  %432 = vperm.xlu0 %546, %v555_v63   ;;  %568 = vpow2.f32 %v355_v8 }
 0x1ad   :  { %v559_v6 = vpop.eup %558  ;;  %423 = vperm.xlu1 %547, %v557_v5   ;;  %570 = vpow2.f32 %v369_v13 }
 0x1ae   :  { %420 = vperm.xlu2 %545, %v559_v6   ;;  %v561_v12 = vpop.eup %560  ;;  %572 = vpow2.f32 %v373_v4 }
 0x1af   :  { %v563_v19 = vpop.eup %562  ;;  %574 = vpow2.f32 %v357_v34 }
 0x1b0   :  { %v565_v26 = vpop.eup %564  ;;  %576 = vpow2.f32 %v361_v42  ;;  %v285_v42 = vmul.f32 1.442695, %v283_v17 }
 0x1b1   :  { %v567_v0 = vpop.eup %566  ;;  %578 = vpow2.f32 %v375_v37 }
 0x1b2   :  { %v569_v38 = vpop.eup %568  ;;  %580 = vpow2.f32 %v287_v40 }
 0x1b3   :  { %v571_v39 = vpop.eup %570  ;;  %582 = vpow2.f32 %v285_v42 }
 0x1b4   :  { %414 = vperm.xlu0 %546, %v561_v12   ;;  %v573_v43 = vpop.eup %572 }
 0x1b5   :  { %426 = vperm.xlu1 %547, %v563_v19   ;;  %v575_v44 = vpop.eup %574 }
 0x1b6   :  { %402 = vperm.xlu2 %545, %v565_v26   ;;  %v577_v25 = vpop.eup %576 }
 0x1b7   :  { %v579_v45 = vpop.eup %578 }
 0x1b8   :  { %v581_v37 = vpop.eup %580 }
 0x1bc   :  { %441 = vperm.xlu0 %546, %v567_v0  }
 0x1bd   :  { %408 = vperm.xlu1 %547, %v569_v38  }
 0x1be   :  { %429 = vperm.xlu2 %545, %v571_v39  }
 0x1c5   :  { %435 = vperm.xlu1 %547, %v573_v43   ;;  %v282_v43 = vld [vmem:[#allocation3 + $0x8] sm:$0xff] }
 0x1c6   :  { %411 = vperm.xlu2 %545, %v575_v44   ;;  %v290_v44 = vmul.f32 %v581_v37, %v282_v43 }
 0x1cd   :  { %417 = vperm.xlu1 %547, %v577_v25  }
 0x1ce   :  { %438 = vperm.xlu2 %545, %v579_v45  }
 0x1e8   :  { %v400_v46 = vpop.permute.xlu2 %399 }
 0x1e9   :  { %v444_v21 = vperm.slane %v400_v46, %v785_v33  ;;  %v583_v46 = vpop.eup %582 }
 0x201   :  { %v397_v22 = vpop.permute.xlu1 %396 }
 0x202   :  { %v406_v56 = vpop.permute.xlu0 %405  ;;  %v443_v59 = vperm.slane %v397_v22, %v785_v33 }
 0x203   :  { %v446_v48 = vperm.slane %v406_v56, %v785_v33 }
 0x204   :  { %v459_v62 = vsel %vm249_vm2, %v444_v21, %v443_v59 }
 0x208   :  { %v421_v28 = vpop.permute.xlu2 %420 }
 0x209   :  { %v451_v58 = vperm.slane %v421_v28, %v785_v33  ;;  %v281_v28 = vld [vmem:[#allocation3] sm:$0xff] }
 0x20a   :  { %v289_v22 = vmul.f32 %v583_v46, %v281_v28 }
 0x210   :  { %v403_v31 = vpop.permute.xlu2 %402 }
 0x211   :  { %v445_v27 = vperm.slane %v403_v31, %v785_v33 }
 0x213   :  { %v460_v3 = vsel %vm251_vm3, %v445_v27, %v459_v62 }
 0x214   :  { %v461_v13 = vsel %vm253_vm4, %v446_v48, %v460_v3 }
 0x218   :  { %v430_v49 = vpop.permute.xlu2 %429 }
 0x219   :  { %v454_v61 = vperm.slane %v430_v49, %v785_v33 }
 0x21e   :  { %v433_v55 = vpop.permute.xlu0 %432 }
 0x21f   :  { %v424_v47 = vpop.permute.xlu1 %423  ;;  %v455_v5 = vperm.slane %v433_v55, %v785_v33 }
 0x220   :  { %v412_v51 = vpop.permute.xlu2 %411  ;;  %v452_v53 = vperm.slane %v424_v47, %v785_v33 }
 0x221   :  { %v448_v32 = vperm.slane %v412_v51, %v785_v33 }
 0x222   :  { %v466_v60 = vsel %vm249_vm2, %v452_v53, %v451_v58 }
 0x226   :  { %v415_v52 = vpop.permute.xlu0 %414 }
 0x227   :  { %v427_v50 = vpop.permute.xlu1 %426  ;;  %v449_v0 = vperm.slane %v415_v52, %v785_v33 }
 0x228   :  { %v453_v54 = vperm.slane %v427_v50, %v785_v33  ;;  %v439_v63 = vpop.permute.xlu2 %438  ;;  %v492_v50 = vld [vmem:[#allocation2 + $0x8] sm:$0xff] }
 0x229   :  { %v457_v8 = vperm.slane %v439_v63, %v785_v33 }
 0x22a   :  { %v467_v35 = vsel %vm251_vm3, %v453_v54, %v466_v60 }
 0x22b   :  { %v468_v1 = vsel %vm253_vm4, %v454_v61, %v467_v35 }
 0x22c   :  { %v469_v9 = vsel %vm255_vm5, %v455_v5, %v468_v1 }
 0x22e   :  { %v442_v6 = vpop.permute.xlu0 %441 }
 0x22f   :  { %v409_v57 = vpop.permute.xlu1 %408  ;;  %v458_v12 = vperm.slane %v442_v6, %v785_v33 }
 0x230   :  { %v447_v29 = vperm.slane %v409_v57, %v785_v33 }
 0x232   :  { %v462_v19 = vsel %vm255_vm5, %v447_v29, %v461_v13 }
 0x233   :  { %v463_v2 = vsel %vm257_vm6, %v448_v32, %v462_v19 }
 0x234   :  { %v464_v38 = vsel %vm259_vm7, %v449_v0, %v463_v2 }
 0x237   :  { %v436_v24 = vpop.permute.xlu1 %435 }
 0x238   :  { %v456_v7 = vperm.slane %v436_v24, %v785_v33 }
 0x23a   :  { %v470_v15 = vsel %vm257_vm6, %v456_v7, %v469_v9 }
 0x23b   :  { %v471_v26 = vsel %vm259_vm7, %v457_v8, %v470_v15 }
 0x23c   :  { %v472_v30 = vsel %vm261_vm8, %v458_v12, %v471_v26 }
 0x23d   :  { %v478_v4 = vsel %vm272_vm9, %v472_v30, 0.0 }
 0x23e   :  { %479 = vadd.xlane.f32.xlu1 %v478_v4 }
 0x23f   :  { %v418_v34 = vpop.permute.xlu1 %417 }
 0x240   :  { %v450_v36 = vperm.slane %v418_v34, %v785_v33 }
 0x242   :  { %v465_v39 = vsel %vm261_vm8, %v450_v36, %v464_v38 }
 0x243   :  { %v475_v41 = vsel %vm272_vm9, %v465_v39, 0.0 }
 0x244   :  { %476 = vadd.xlane.f32.xlu2 %v475_v41 }
 0x2b1   :  { %v480_v25 = vpop.xlane.xlu1 %479 }
 0x2b2   :  { %v482_v45 = vadd.f32 %v480_v25, %v290_v44 }
 0x2b4   :  { %485 = vst.msk [vmem:[#allocation3 + $0x8] sm:$0xff] %vm79_vm10, %v482_v45 }
 0x2b7   :  { %v477_v31 = vpop.xlane.xlu2 %476 }
 0x2b8   :  { %v481_v56 = vadd.f32 %v477_v31, %v289_v22 }
 0x2ba   :  { %484 = vst.msk [vmem:[#allocation3] sm:$0xff] %vm79_vm10, %v481_v56 }
 0x2bb   :  { %v494_v20 = vld [vmem:[#allocation3 + $0x8] sm:$0xff] }
 0x2c1   :  { %v493_v18 = vld [vmem:[#allocation3] sm:$0xff] }
 0x2c2   :  { %584 = vlog2.f32 %v493_v18 }
 0x2c3   :  { %586 = vlog2.f32 %v494_v20 }
 0x2c8   :  { %v585_v14 = vpop.eup %584 }
 0x2c9   :  { %v496_v16 = vmul.f32 0.6931472, %v585_v14  ;;  %v587_v17 = vpop.eup %586 }
 0x2ca   :  { %v498_v55 = vmul.f32 0.6931472, %v587_v17 }
 0x2cb   :  { %v499_v47 = vadd.f32 %v496_v16, %v491_v23 }
 0x2cc   :  { %v500_v51 = vadd.f32 %v498_v55, %v492_v50 }
 0x2cd   :  { %v501_v49 = vsub.f32 %v499_v47, %v849_v10 }
 0x2ce   :  { %v502_v52 = vsub.f32 %v500_v51, %v853_v11 }
 0x2cf   :  { %506 = vperm.xlu0 %546, %v501_v49  }
 0x2d7   :  { %509 = vperm.xlu0 %546, %v502_v52  }
 0x341   :  { %v507_v53 = vpop.permute.xlu0 %506 }
 0x342   :  { %v511_v57 = vperm.slane %v507_v53, %v785_v33 }
 0x349   :  { %v510_v54 = vpop.permute.xlu0 %509 }
 0x34a   :  { %v512_v58 = vperm.slane %v510_v54, %v785_v33 }
 0x34c   :  { %v513_v10 = vsel %vm249_vm2, %v512_v58, %v511_v57 }
 0x34d   :  { %516 = vst.msk [vmem:[#allocation10] sm:$0x3] %vm515_vm11, %v513_v10 }
 0x34e   :  { %527 = dma.vmem_to_hbm [thread:$0]  %s523_s2, 32, %s525_s5, [#allocation6]  }
 0x34f   :  { %688 = dma.done.wait [#allocation6], 32  }
 0x350   :  { %689 = vsyncadd [#allocation6], 4294967264 }
 0x351   :  { %532 = vsyncpa [#allocation5], 1 }
 0x352   :  { %533 = vsyncpa [#allocation8], 1 }
 0x353   :  { %534 = vsyncpa [#allocation6], 1 }

</bundles_post_ra>
